<compile_context>
chip_gen: v7x
topology: tpu7x:2x2x1
jax: 0.10.0
libtpu: 0.0.40
codegen_flags: <defaults>
</compile_context>

<pallas_src>
import functools

import jax
import jax.numpy as jnp
from jax.experimental import pallas as pl
from jax.experimental.pallas import tpu as pltpu

IN_DIM = 28 * 28          # 784
IN_PAD = 896              # 7 * 128  (lane-dense K for the first matmul)
HID_DIM = 512
OUT_DIM = 10
OUT_PAD = 128             # lane-dense N for the second matmul / output store
LEAKY_SLOPE = 0.01        # torch.nn.LeakyReLU default negative_slope
NEG_BIG = -1e30           # "minus infinity" baked into padded b2 columns


def _round_up(n, m):
    return ((n + m - 1) // m) * m


def _mnist_kernel(x_ref, w1_ref, b1_ref, w2_ref, b2_ref, o_ref):
    # ---- fc1: (TB, 896)bf16 @ (896, 512)bf16 -> f32, + bias ----
    h = jnp.dot(x_ref[...], w1_ref[...], preferred_element_type=jnp.float32)
    h = h + b1_ref[...]
    # ---- LeakyReLU (slope < 1 so max(h, slope*h) == leaky_relu(h)) ----
    h = jnp.maximum(h, LEAKY_SLOPE * h)
    # ---- fc2: (TB, 512)bf16 @ (512, 128)bf16 -> f32, + bias ----
    logits = jnp.dot(h.astype(jnp.bfloat16), w2_ref[...],
                     preferred_element_type=jnp.float32)
    # b2 padding is pre-filled with NEG_BIG, so the 118 padded columns drop
    # out of the softmax without any in-kernel masking.
    logits = logits + b2_ref[...]
    # ---- numerically stable softmax over the (lane-dense) last axis ----
    m = jnp.max(logits, axis=-1, keepdims=True)
    e = jnp.exp(logits - m)
    denom = jnp.sum(e, axis=-1, keepdims=True)
    o_ref[...] = (e * pl.reciprocal(denom, approx=True)).astype(o_ref.dtype)


def prepare_params(w1, b1, w2, b2):
    """Pad + cast PyTorch-layout-equivalent params once (outside the kernel).

    w1: (784, 512) f32  -> (896, 512) bf16 (zero-padded K rows)
    b1: (1, 512)   f32  -> (1, 512)   f32
    w2: (512, 10)  f32  -> (512, 128) bf16 (zero-padded N cols)
    b2: (1, 10)    f32  -> (1, 128)   f32 (padding filled with NEG_BIG so the
                                           extra logit columns vanish in softmax)
    """
    w1p = jnp.zeros((IN_PAD, HID_DIM), jnp.bfloat16)
    w1p = w1p.at[:IN_DIM, :].set(w1.astype(jnp.bfloat16))
    b1p = jnp.asarray(b1, jnp.float32).reshape(1, HID_DIM)
    w2p = jnp.zeros((HID_DIM, OUT_PAD), jnp.bfloat16)
    w2p = w2p.at[:, :OUT_DIM].set(w2.astype(jnp.bfloat16))
    b2p = jnp.full((1, OUT_PAD), NEG_BIG, jnp.float32)
    b2p = b2p.at[:, :OUT_DIM].set(jnp.asarray(b2, jnp.float32).reshape(1, OUT_DIM))
    return w1p, b1p, w2p, b2p


@functools.partial(jax.jit, static_argnames=("tb",))
def mnist_net(x, w1p, b1p, w2p, b2p, tb=256):
    """x: (B, 784) f32.  Returns softmax probabilities (B, 10) f32."""
    B = x.shape[0]
    # Tile the batch; for tiny batches shrink the tile instead of padding to 256.
    tb_eff = min(tb, _round_up(B, 8))
    b_pad = _round_up(B, tb_eff)
    grid = (pl.cdiv(b_pad, tb_eff),)

    # Pad batch + feature dims and cast activations to bf16 (halves HBM traffic).
    xb = jnp.zeros((b_pad, IN_PAD), jnp.bfloat16)
    xb = xb.at[:B, :IN_DIM].set(x.astype(jnp.bfloat16))

    out = pl.pallas_call(
        _mnist_kernel,
        out_shape=jax.ShapeDtypeStruct((b_pad, OUT_PAD), jnp.float32),
        grid=grid,
        in_specs=[
            pl.BlockSpec((tb_eff, IN_PAD), lambda i: (i, 0)),   # x: batch-tiled
            pl.BlockSpec((IN_PAD, HID_DIM), lambda i: (0, 0)),  # w1: resident
            pl.BlockSpec((1, HID_DIM), lambda i: (0, 0)),       # b1: resident
            pl.BlockSpec((HID_DIM, OUT_PAD), lambda i: (0, 0)), # w2: resident
            pl.BlockSpec((1, OUT_PAD), lambda i: (0, 0)),       # b2: resident
        ],
        out_specs=pl.BlockSpec((tb_eff, OUT_PAD), lambda i: (i, 0)),
        compiler_params=pltpu.CompilerParams(
            dimension_semantics=("parallel",),
        ),
    )(xb, w1p, b1p, w2p, b2p)

    return out[:B, :OUT_DIM]


def init_params(key):
    """Deterministic init matching torch.nn.Linear's U(-1/sqrt(fan_in), 1/sqrt(fan_in))."""
    k1, k2, k3, k4 = jax.random.split(key, 4)
    bound1 = 1.0 / (IN_DIM ** 0.5)
    bound2 = 1.0 / (HID_DIM ** 0.5)
    # Stored as (in_features, out_features) so the kernel computes x @ W.
    w1 = jax.random.uniform(k1, (IN_DIM, HID_DIM), jnp.float32, -bound1, bound1)
    b1 = jax.random.uniform(k2, (1, HID_DIM), jnp.float32, -bound1, bound1)
    w2 = jax.random.uniform(k3, (HID_DIM, OUT_DIM), jnp.float32, -bound2, bound2)
    b2 = jax.random.uniform(k4, (1, OUT_DIM), jnp.float32, -bound2, bound2)
    return w1, b1, w2, b2


if __name__ == "__main__":
    key = jax.random.PRNGKey(0)
    kx, kp = jax.random.split(key)

    B = 8  # small batch for the demo; kernel tiles larger batches by 256 rows
    x = jax.random.normal(kx, (B, IN_DIM), jnp.float32)
    w1, b1, w2, b2 = init_params(kp)

    params = prepare_params(w1, b1, w2, b2)
    out = mnist_net(x, *params)
    out = jax.block_until_ready(out)
    assert out.shape == (B, OUT_DIM)

    # Reference 1: same bf16-activation / f32-accumulate math (tight check).
    hb = jnp.dot(x.astype(jnp.bfloat16), w1.astype(jnp.bfloat16),
                 preferred_element_type=jnp.float32) + b1
    hb = jnp.where(hb > 0, hb, LEAKY_SLOPE * hb)
    logits_b = jnp.dot(hb.astype(jnp.bfloat16), w2.astype(jnp.bfloat16),
                       preferred_element_type=jnp.float32) + b2
    ref_bf16 = jax.nn.softmax(logits_b, axis=-1)
    assert jnp.allclose(out, ref_bf16, atol=5e-3, rtol=1e-3)

    # Reference 2: full-f32 PyTorch-equivalent math (loose sanity check).
    hf = x @ w1 + b1
    hf = jnp.where(hf > 0, hf, LEAKY_SLOPE * hf)
    ref_f32 = jax.nn.softmax(hf @ w2 + b2, axis=-1)
    assert jnp.allclose(out, ref_f32, atol=3e-2)

    # Probabilities sum to 1 (approx reciprocal keeps this within ~1e-3).
    assert jnp.allclose(jnp.sum(out, axis=-1), 1.0, atol=1e-2)

    print("KERNEL_OK")
</pallas_src>

<mosaic_0001>
module attributes {stable_mosaic.version = 11 : i64} {
  func.func @_mnist_kernel(%arg0: i32, %arg1: memref<8x896xbf16, #tpu.memory_space<vmem>>, %arg2: memref<896x512xbf16, #tpu.memory_space<vmem>>, %arg3: memref<1x512xf32, #tpu.memory_space<vmem>>, %arg4: memref<512x128xbf16, #tpu.memory_space<vmem>>, %arg5: memref<1x128xf32, #tpu.memory_space<vmem>>, %arg6: memref<8x128xf32, #tpu.memory_space<vmem>>) attributes {dimension_semantics = [#tpu.dimension_semantics<parallel>], iteration_bounds = array<i64: 1>, scalar_prefetch = 0 : i64, scratch_operands = 0 : i64, tpu.core_type = #tpu.core_type<tc>, window_params = [{transform_indices = @transform_0, window_bounds = array<i64: 8, 896>}, {pipeline_mode = #tpu.pipeline_mode<synchronous>, transform_indices = @transform_1, window_bounds = array<i64: 896, 512>}, {pipeline_mode = #tpu.pipeline_mode<synchronous>, transform_indices = @transform_2, window_bounds = array<i64: 1, 512>}, {pipeline_mode = #tpu.pipeline_mode<synchronous>, transform_indices = @transform_3, window_bounds = array<i64: 512, 128>}, {pipeline_mode = #tpu.pipeline_mode<synchronous>, transform_indices = @transform_4, window_bounds = array<i64: 1, 128>}, {transform_indices = @transform_5, window_bounds = array<i64: 8, 128>}]} {
    %c0 = arith.constant 0 : index
    %c0_0 = arith.constant 0 : index
    %0 = vector.load %arg1[%c0, %c0_0] : memref<8x896xbf16, #tpu.memory_space<vmem>>, vector<8x896xbf16>
    %c0_1 = arith.constant 0 : index
    %c0_2 = arith.constant 0 : index
    %1 = vector.load %arg2[%c0_1, %c0_2] : memref<896x512xbf16, #tpu.memory_space<vmem>>, vector<896x512xbf16>
    %cst = arith.constant dense<0.000000e+00> : vector<8x512xf32>
    %2 = tpu.matmul %0, %1, %cst {dimension_numbers = #tpu.dot_dimension_numbers<[1], [0], [0], [1], [0, 0, 1, 1], [], []>} : vector<8x896xbf16>, vector<896x512xbf16>, vector<8x512xf32> -> vector<8x512xf32>
    %c0_3 = arith.constant 0 : index
    %c0_4 = arith.constant 0 : index
    %3 = vector.load %arg3[%c0_3, %c0_4] : memref<1x512xf32, #tpu.memory_space<vmem>>, vector<1x512xf32>
    %4 = vector.broadcast %3 : vector<1x512xf32> to vector<8x512xf32>
    %5 = arith.addf %2, %4 : vector<8x512xf32>
    %cst_5 = arith.constant 0.00999999977 : f32
    %6 = vector.broadcast %cst_5 : f32 to vector<8x512xf32>
    %7 = arith.mulf %6, %5 : vector<8x512xf32>
    %8 = arith.maximumf %5, %7 : vector<8x512xf32>
    %9 = arith.truncf %8 : vector<8x512xf32> to vector<8x512xbf16>
    %c0_6 = arith.constant 0 : index
    %c0_7 = arith.constant 0 : index
    %10 = vector.load %arg4[%c0_6, %c0_7] : memref<512x128xbf16, #tpu.memory_space<vmem>>, vector<512x128xbf16>
    %cst_8 = arith.constant dense<0.000000e+00> : vector<8x128xf32>
    %11 = tpu.matmul %9, %10, %cst_8 {dimension_numbers = #tpu.dot_dimension_numbers<[1], [0], [0], [1], [0, 0, 1, 1], [], []>} : vector<8x512xbf16>, vector<512x128xbf16>, vector<8x128xf32> -> vector<8x128xf32>
    %c0_9 = arith.constant 0 : index
    %c0_10 = arith.constant 0 : index
    %12 = vector.load %arg5[%c0_9, %c0_10] : memref<1x128xf32, #tpu.memory_space<vmem>>, vector<1x128xf32>
    %13 = vector.broadcast %12 : vector<1x128xf32> to vector<8x128xf32>
    %14 = arith.addf %11, %13 : vector<8x128xf32>
    %cst_11 = arith.constant dense<0xFF800000> : vector<8xf32>
    %15 = vector.multi_reduction <maximumf>, %14, %cst_11 [1] : vector<8x128xf32> to vector<8xf32>
    %16 = vector.shape_cast %15 : vector<8xf32> to vector<8x1xf32>
    %17 = vector.broadcast %16 : vector<8x1xf32> to vector<8x128xf32>
    %18 = arith.subf %14, %17 : vector<8x128xf32>
    %19 = math.exp %18 : vector<8x128xf32>
    %cst_12 = arith.constant dense<0.000000e+00> : vector<8xf32>
    %20 = vector.multi_reduction <add>, %19, %cst_12 [1] : vector<8x128xf32> to vector<8xf32>
    %21 = vector.shape_cast %20 : vector<8xf32> to vector<8x1xf32>
    %22 = tpu.reciprocal %21 {approx = true} : vector<8x1xf32> -> vector<8x1xf32>
    %23 = vector.broadcast %22 : vector<8x1xf32> to vector<8x128xf32>
    %24 = arith.mulf %19, %23 : vector<8x128xf32>
    %c0_13 = arith.constant 0 : index
    %c0_14 = arith.constant 0 : index
    %25 = vector.load %arg6[%c0_13, %c0_14] : memref<8x128xf32, #tpu.memory_space<vmem>>, vector<8x128xf32>
    tpu.vector_store %arg6[%c0_13, %c0_14], %24 {strides = array<i32>} : memref<8x128xf32, #tpu.memory_space<vmem>>, vector<8x128xf32>,
    return
  }
  func.func @transform_0(%arg0: i32) -> (i32, i32) {
    %c0_i32 = arith.constant 0 : i32
    %c0_i32_0 = arith.constant 0 : i32
    return %arg0, %c0_i32 : i32, i32
  }
  func.func @transform_1(%arg0: i32) -> (i32, i32) {
    %c0_i32 = arith.constant 0 : i32
    %c0_i32_0 = arith.constant 0 : i32
    %c0_i32_1 = arith.constant 0 : i32
    return %c0_i32, %c0_i32_0 : i32, i32
  }
  func.func @transform_2(%arg0: i32) -> (i32, i32) {
    %c0_i32 = arith.constant 0 : i32
    %c0_i32_0 = arith.constant 0 : i32
    %c0_i32_1 = arith.constant 0 : i32
    return %c0_i32, %c0_i32_0 : i32, i32
  }
  func.func @transform_3(%arg0: i32) -> (i32, i32) {
    %c0_i32 = arith.constant 0 : i32
    %c0_i32_0 = arith.constant 0 : i32
    %c0_i32_1 = arith.constant 0 : i32
    return %c0_i32, %c0_i32_0 : i32, i32
  }
  func.func @transform_4(%arg0: i32) -> (i32, i32) {
    %c0_i32 = arith.constant 0 : i32
    %c0_i32_0 = arith.constant 0 : i32
    %c0_i32_1 = arith.constant 0 : i32
    return %c0_i32, %c0_i32_0 : i32, i32
  }
  func.func @transform_5(%arg0: i32) -> (i32, i32) {
    %c0_i32 = arith.constant 0 : i32
    %c0_i32_0 = arith.constant 0 : i32
    return %arg0, %c0_i32 : i32, i32
  }
}

</mosaic_0001>

<bundles_post_ra>
// kernel: mnist_net.1
= control target key start
LH: loop header
LB: loop body
LE: loop exit
PB: predicated region body
PF: predicated region fallthrough
CT: control target
= control target key end

     0   :  { %10 = vsyncpa [#allocation3], 0  ;;  %s3053_s0 = inlined_call_operand.vmem [shape: bf16[8,896], index: 0, kind: input, shape index: {}]   ;;  %s3054_s1 = inlined_call_operand.hbm [shape: bf16[896,512], index: 1, kind: input, shape index: {}]   ;;  %s3055_s2 = inlined_call_operand.vmem [shape: f32[1,512], index: 2, kind: input, shape index: {}]   ;;  %s3056_s3 = inlined_call_operand.hbm [shape: bf16[512,128], index: 3, kind: input, shape index: {}]   ;;  %s3057_s4 = inlined_call_operand.vmem [shape: f32[1,128], index: 4, kind: input, shape index: {}]   ;;  %s3058_s5 = inlined_call_operand.hbm [shape: f32[8,128], index: 5, kind: output, shape index: {}]  }
   0x1   :  { %11 = vsyncpa [#allocation6], 0 }
   0x2   :  { %12 = vsyncpa [#allocation4], 0  ;;  %s2949_s18 = smov [#allocation2]   ;;  %s2877_s22 = scalar_lea.hbm %s3054_s1, 28672 }
   0x3   :  { %s20_s19 = sshll.u32 %s2949_s18, 4  ;;  %p2878_p0 = scmp.ne.s32.totalorder %s3054_s1, %s2877_s22  ;;  %s21_s19 = int_to_ptr.vmem [resolvable:$true] %s20_s19 }
   0x4   :  { %p2881_p1 = scmp.lt.u32.totalorder %s2877_s22, %s3054_s1 }
   0x6   :  { %p2883_p2 = pnand %p2881_p1, %p2878_p0 }
   0x8   :  { %2886 = shalt.err (!%p2883_p2)
}
   0x9   :  { %s2887_s27 = scalar_lea.vmem %s21_s19, 28672  ;;  %p2892_p4 = scmp.lt.s32.totalorder %s21_s19, %s21_s19 }
   0xa   :  { %p2888_p3 = scmp.ne.s32.totalorder %s21_s19, %s2887_s27  ;;  %p2893_p5 = scmp.lt.s32.totalorder %s2887_s27, %s2887_s27 }
   0xc   :  { %p2894_p6 = por %p2893_p5, %p2892_p4 }
   0xe   :  { %p2895_p7 = pnand %p2894_p6, %p2888_p3 }
  0x10   :  { %2898 = shalt.err (!%p2895_p7)
}
  0x11   :  { %s2950_s28 = smov 256   ;;  %s2951_s29 = smov 16  }
  0x12   :  { %26 = dma.hbm_to_vmem [thread:$0]  %s3054_s1, 28672, %s21_s19, [#allocation3], %s2950_s28, %s2950_s28, %s2951_s29  }
  0x13   :  { %s2952_s7 = smov [#allocation5]   ;;  %s2899_s11 = scalar_lea.hbm %s3056_s3, 4096 }
  0x14   :  { %s34_s8 = sshll.u32 %s2952_s7, 4  ;;  %p2900_p8 = scmp.ne.s32.totalorder %s3056_s3, %s2899_s11  ;;  %s35_s8 = int_to_ptr.vmem [resolvable:$true] %s34_s8 }
  0x15   :  { %p2903_p9 = scmp.lt.u32.totalorder %s2899_s11, %s3056_s3 }
  0x17   :  { %p2905_p10 = pnand %p2903_p9, %p2900_p8 }
  0x19   :  { %2908 = shalt.err (!%p2905_p10)
}
  0x1a   :  { %s2909_s16 = scalar_lea.vmem %s35_s8, 4096  ;;  %p2914_p12 = scmp.lt.s32.totalorder %s35_s8, %s35_s8 }
  0x1b   :  { %p2910_p11 = scmp.ne.s32.totalorder %s35_s8, %s2909_s16  ;;  %p2915_p13 = scmp.lt.s32.totalorder %s2909_s16, %s2909_s16 }
  0x1d   :  { %p2916_p0 = por %p2915_p13, %p2914_p12 }
  0x1f   :  { %p2917_p1 = pnand %p2916_p0, %p2910_p11 }
  0x21   :  { %2920 = shalt.err (!%p2917_p1)
}
  0x22   :  { %s2953_s1 = smov 64   ;;  %s2954_s17 = smov 4  }
  0x23   :  { %40 = dma.hbm_to_vmem [thread:$0]  %s3056_s3, 4096, %s35_s8, [#allocation6], %s2953_s1, %s2953_s1, %s2954_s17  }
  0x24   :  { %2943 = dma.done.wait [#allocation3], 28672  }
  0x25   :  { %2944 = vsyncadd [#allocation3], 4294938624 }
  0x26   :  { %2945 = dma.done.wait [#allocation6], 4096  }
  0x27   :  { %2946 = vsyncadd [#allocation6], 4294963200  ;;  %v2498_v0 = vld [vmem:[#allocation2 + $0x4] ss:$16 sps:$4 sm:$0xff]   ;;  %v2500_v1 = vld [vmem:[#allocation2 + $0xc] ss:$16 sps:$4 sm:$0xff]  }
  0x28   :  { %1445 = vmatprep.subr.bf16.mxu0 %v2498_v0  ;;  %v2502_v2 = vld [vmem:[#allocation2] ss:$16 sps:$4 sm:$0xff]   ;;  %v2503_v3 = vld [vmem:[#allocation2 + $0x8] ss:$16 sps:$4 sm:$0xff]   ;;  %1609 = vmatprep.subr.bf16.mxu1 %v2500_v1  ;;  %v2504_v4 = vld [vmem:[#allocation2 + $0x24] ss:$16 sps:$4 sm:$0xff]  }
  0x29   :  { %1446 = vmatpush1.bf16.msra.mxu0 %v2502_v2  ;;  %1610 = vmatpush1.bf16.msra.mxu1 %v2503_v3  ;;  %v2506_v5 = vld [vmem:[#allocation2 + $0x2c] ss:$16 sps:$4 sm:$0xff]   ;;  %v2508_v6 = vld [vmem:[#allocation2 + $0x20] ss:$16 sps:$4 sm:$0xff]   ;;  %v2509_v7 = vld [vmem:[#allocation2 + $0x28] ss:$16 sps:$4 sm:$0xff]  }
  0x2a   :  { %1447 = vmatprep.subr.bf16.mxu0 %v2504_v4  ;;  %1611 = vmatprep.subr.bf16.mxu1 %v2506_v5  ;;  %v2510_v8 = vld [vmem:[#allocation2 + $0x44] ss:$16 sps:$4 sm:$0xff]   ;;  %v2512_v9 = vld [vmem:[#allocation2 + $0x4c] ss:$16 sps:$4 sm:$0xff]   ;;  %v2514_v10 = vld [vmem:[#allocation2 + $0x40] ss:$16 sps:$4 sm:$0xff]  }
  0x2b   :  { %v2515_v11 = vld [vmem:[#allocation2 + $0x48] ss:$16 sps:$4 sm:$0xff]   ;;  %v2516_v12 = vld [vmem:[#allocation2 + $0x64] ss:$16 sps:$4 sm:$0xff]   ;;  %v2518_v13 = vld [vmem:[#allocation2 + $0x6c] ss:$16 sps:$4 sm:$0xff]  }
  0x2c   :  { %v2520_v14 = vld [vmem:[#allocation2 + $0x60] ss:$16 sps:$4 sm:$0xff]   ;;  %v2521_v15 = vld [vmem:[#allocation2 + $0x68] ss:$16 sps:$4 sm:$0xff]   ;;  %v2522_v16 = vld [vmem:[#allocation2 + $0x84] ss:$16 sps:$4 sm:$0xff]  }
  0x2d   :  { %1448 = vmatpush1.bf16.msra.mxu0 %v2508_v6  ;;  %1612 = vmatpush1.bf16.msra.mxu1 %v2509_v7  ;;  %v2524_v17 = vld [vmem:[#allocation2 + $0x8c] ss:$16 sps:$4 sm:$0xff]   ;;  %v2526_v18 = vld [vmem:[#allocation2 + $0x80] ss:$16 sps:$4 sm:$0xff]   ;;  %v2527_v19 = vld [vmem:[#allocation2 + $0x88] ss:$16 sps:$4 sm:$0xff]  }
  0x2e   :  { %1449 = vmatprep.subr.bf16.mxu0 %v2510_v8  ;;  %1613 = vmatprep.subr.bf16.mxu1 %v2512_v9  ;;  %v2528_v20 = vld [vmem:[#allocation2 + $0xa4] ss:$16 sps:$4 sm:$0xff]   ;;  %v2530_v21 = vld [vmem:[#allocation2 + $0xac] ss:$16 sps:$4 sm:$0xff]   ;;  %v2532_v22 = vld [vmem:[#allocation2 + $0xa0] ss:$16 sps:$4 sm:$0xff]  }
  0x2f   :  { %v2533_v23 = vld [vmem:[#allocation2 + $0xa8] ss:$16 sps:$4 sm:$0xff]   ;;  %v2534_v24 = vld [vmem:[#allocation2 + $0xc4] ss:$16 sps:$4 sm:$0xff]   ;;  %v2536_v25 = vld [vmem:[#allocation2 + $0xcc] ss:$16 sps:$4 sm:$0xff]  }
  0x30   :  { %v2538_v26 = vld [vmem:[#allocation2 + $0xc0] ss:$16 sps:$4 sm:$0xff]   ;;  %v2539_v27 = vld [vmem:[#allocation2 + $0xc8] ss:$16 sps:$4 sm:$0xff]   ;;  %v2540_v28 = vld [vmem:[#allocation2 + $0xe4] ss:$16 sps:$4 sm:$0xff]  }
  0x31   :  { %1450 = vmatpush1.bf16.msra.mxu0 %v2514_v10  ;;  %1614 = vmatpush1.bf16.msra.mxu1 %v2515_v11  ;;  %v2542_v29 = vld [vmem:[#allocation2 + $0xec] ss:$16 sps:$4 sm:$0xff]   ;;  %v2544_v30 = vld [vmem:[#allocation2 + $0xe0] ss:$16 sps:$4 sm:$0xff]   ;;  %v2545_v31 = vld [vmem:[#allocation2 + $0xe8] ss:$16 sps:$4 sm:$0xff]  }
  0x32   :  { %1451 = vmatprep.subr.bf16.mxu0 %v2516_v12  ;;  %1615 = vmatprep.subr.bf16.mxu1 %v2518_v13  ;;  %v2546_v32 = vld [vmem:[#allocation2 + $0x104] ss:$16 sps:$4 sm:$0xff]   ;;  %v2548_v33 = vld [vmem:[#allocation2 + $0x10c] ss:$16 sps:$4 sm:$0xff]   ;;  %v2550_v34 = vld [vmem:[#allocation2 + $0x100] ss:$16 sps:$4 sm:$0xff]  }
  0x33   :  { %v2551_v35 = vld [vmem:[#allocation2 + $0x108] ss:$16 sps:$4 sm:$0xff]   ;;  %v2552_v36 = vld [vmem:[#allocation2 + $0x124] ss:$16 sps:$4 sm:$0xff]   ;;  %v2554_v37 = vld [vmem:[#allocation2 + $0x12c] ss:$16 sps:$4 sm:$0xff]  }
  0x34   :  { %v2556_v38 = vld [vmem:[#allocation2 + $0x120] ss:$16 sps:$4 sm:$0xff]   ;;  %v2557_v39 = vld [vmem:[#allocation2 + $0x128] ss:$16 sps:$4 sm:$0xff]   ;;  %v2558_v40 = vld [vmem:[#allocation2 + $0x144] ss:$16 sps:$4 sm:$0xff]  }
  0x35   :  { %1452 = vmatpush1.bf16.msra.mxu0 %v2520_v14  ;;  %1616 = vmatpush1.bf16.msra.mxu1 %v2521_v15  ;;  %v2560_v41 = vld [vmem:[#allocation2 + $0x14c] ss:$16 sps:$4 sm:$0xff]   ;;  %v2562_v42 = vld [vmem:[#allocation2 + $0x140] ss:$16 sps:$4 sm:$0xff]   ;;  %v2563_v43 = vld [vmem:[#allocation2 + $0x148] ss:$16 sps:$4 sm:$0xff]  }
  0x36   :  { %1453 = vmatprep.subr.bf16.mxu0 %v2522_v16  ;;  %1617 = vmatprep.subr.bf16.mxu1 %v2524_v17  ;;  %v2564_v44 = vld [vmem:[#allocation2 + $0x164] ss:$16 sps:$4 sm:$0xff]   ;;  %v2566_v45 = vld [vmem:[#allocation2 + $0x16c] ss:$16 sps:$4 sm:$0xff]   ;;  %v2568_v47 = vld [vmem:[#allocation2 + $0x160] ss:$16 sps:$4 sm:$0xff]  }
  0x37   :  { %v50_v46 = vld [vmem:[%s3053_s0] sm:$0xff]  ;;  %v2569_v49 = vld [vmem:[#allocation2 + $0x168] ss:$16 sps:$4 sm:$0xff]   ;;  %v2572_v51 = vld [vmem:[#allocation2 + $0x18c] ss:$16 sps:$4 sm:$0xff]  }
  0x38   :  { %v2155_v48 = vcombine.high %v50_v46, %v50_v46  ;;  %v2570_v50 = vld [vmem:[#allocation2 + $0x184] ss:$16 sps:$4 sm:$0xff]   ;;  %v2574_v52 = vld [vmem:[#allocation2 + $0x180] ss:$16 sps:$4 sm:$0xff]   ;;  %v2575_v53 = vld [vmem:[#allocation2 + $0x188] ss:$16 sps:$4 sm:$0xff]   ;;  %v2154_v4 = vcombine.low %v50_v46, %v50_v46 }
  0x39   :  { %1454 = vmatpush1.bf16.msra.mxu0 %v2526_v18  ;;  %1618 = vmatpush1.bf16.msra.mxu1 %v2527_v19  ;;  %v2576_v54 = vld [vmem:[#allocation2 + $0x1a4] ss:$16 sps:$4 sm:$0xff]   ;;  %v2578_v55 = vld [vmem:[#allocation2 + $0x1ac] ss:$16 sps:$4 sm:$0xff]   ;;  %v2580_v56 = vld [vmem:[#allocation2 + $0x1a0] ss:$16 sps:$4 sm:$0xff]  }
  0x3a   :  { %1455 = vmatprep.subr.bf16.mxu0 %v2528_v20  ;;  %1619 = vmatprep.subr.bf16.mxu1 %v2530_v21  ;;  %v2581_v57 = vld [vmem:[#allocation2 + $0x1a8] ss:$16 sps:$4 sm:$0xff]   ;;  %v2582_v58 = vld [vmem:[#allocation2 + $0x1c4] ss:$16 sps:$4 sm:$0xff]   ;;  %v2584_v59 = vld [vmem:[#allocation2 + $0x1cc] ss:$16 sps:$4 sm:$0xff]  }
  0x3b   :  { %1477 = vmatprep.mubr.bf16.mxu0 %v2155_v48  ;;  %1641 = vmatprep.mubr.bf16.mxu1 %v2155_v48  ;;  %v2586_v60 = vld [vmem:[#allocation2 + $0x1c0] ss:$16 sps:$4 sm:$0xff]   ;;  %v2587_v61 = vld [vmem:[#allocation2 + $0x1c8] ss:$16 sps:$4 sm:$0xff]   ;;  %v2588_v62 = vld [vmem:[#allocation2 + $0x1e4] ss:$16 sps:$4 sm:$0xff]  }
  0x3c   :  { %v2590_v63 = vld [vmem:[#allocation2 + $0x1ec] ss:$16 sps:$4 sm:$0xff]   ;;  %v2592_v0 = vld [vmem:[#allocation2 + $0x1e0] ss:$16 sps:$4 sm:$0xff]   ;;  %v2593_v1 = vld [vmem:[#allocation2 + $0x1e8] ss:$16 sps:$4 sm:$0xff]  }
  0x3d   :  { %1456 = vmatpush1.bf16.msra.mxu0 %v2532_v22  ;;  %1620 = vmatpush1.bf16.msra.mxu1 %v2533_v23  ;;  %v2598_v2 = vld [vmem:[#allocation2 + $0x204] ss:$16 sps:$4 sm:$0xff]   ;;  %v2601_v3 = vld [vmem:[#allocation2 + $0x20c] ss:$16 sps:$4 sm:$0xff]   ;;  %v2596_v5 = vld [vmem:[#allocation2 + $0x200] ss:$16 sps:$4 sm:$0xff]  }
  0x3e   :  { %1457 = vmatprep.subr.bf16.mxu0 %v2534_v24  ;;  %1621 = vmatprep.subr.bf16.mxu1 %v2536_v25  ;;  %v2599_v6 = vld [vmem:[#allocation2 + $0x208] ss:$16 sps:$4 sm:$0xff]   ;;  %v2604_v7 = vld [vmem:[#allocation2 + $0x224] ss:$16 sps:$4 sm:$0xff]   ;;  %v2607_v8 = vld [vmem:[#allocation2 + $0x22c] ss:$16 sps:$4 sm:$0xff]  }
  0x3f   :  { %v2602_v9 = vld [vmem:[#allocation2 + $0x220] ss:$16 sps:$4 sm:$0xff]   ;;  %v2605_v10 = vld [vmem:[#allocation2 + $0x228] ss:$16 sps:$4 sm:$0xff]   ;;  %v2610_v11 = vld [vmem:[#allocation2 + $0x244] ss:$16 sps:$4 sm:$0xff]  }
  0x40   :  { %v2613_v12 = vld [vmem:[#allocation2 + $0x24c] ss:$16 sps:$4 sm:$0xff]   ;;  %v2608_v13 = vld [vmem:[#allocation2 + $0x240] ss:$16 sps:$4 sm:$0xff]   ;;  %v2611_v14 = vld [vmem:[#allocation2 + $0x248] ss:$16 sps:$4 sm:$0xff]  }
  0x41   :  { %1458 = vmatpush1.bf16.msra.mxu0 %v2538_v26  ;;  %1622 = vmatpush1.bf16.msra.mxu1 %v2539_v27  ;;  %v2616_v15 = vld [vmem:[#allocation2 + $0x264] ss:$16 sps:$4 sm:$0xff]   ;;  %v2619_v16 = vld [vmem:[#allocation2 + $0x26c] ss:$16 sps:$4 sm:$0xff]   ;;  %v2614_v17 = vld [vmem:[#allocation2 + $0x260] ss:$16 sps:$4 sm:$0xff]  }
  0x42   :  { %1459 = vmatprep.subr.bf16.mxu0 %v2540_v28  ;;  %1623 = vmatprep.subr.bf16.mxu1 %v2542_v29  ;;  %v2617_v18 = vld [vmem:[#allocation2 + $0x268] ss:$16 sps:$4 sm:$0xff]   ;;  %v2622_v19 = vld [vmem:[#allocation2 + $0x284] ss:$16 sps:$4 sm:$0xff]   ;;  %v2625_v20 = vld [vmem:[#allocation2 + $0x28c] ss:$16 sps:$4 sm:$0xff]  }
  0x43   :  { %v2620_v21 = vld [vmem:[#allocation2 + $0x280] ss:$16 sps:$4 sm:$0xff]   ;;  %v2623_v22 = vld [vmem:[#allocation2 + $0x288] ss:$16 sps:$4 sm:$0xff]   ;;  %v2628_v23 = vld [vmem:[#allocation2 + $0x2a4] ss:$16 sps:$4 sm:$0xff]  }
  0x44   :  { %v2631_v24 = vld [vmem:[#allocation2 + $0x2ac] ss:$16 sps:$4 sm:$0xff]   ;;  %v2626_v25 = vld [vmem:[#allocation2 + $0x2a0] ss:$16 sps:$4 sm:$0xff]   ;;  %v2629_v26 = vld [vmem:[#allocation2 + $0x2a8] ss:$16 sps:$4 sm:$0xff]  }
  0x45   :  { %1460 = vmatpush1.bf16.msra.mxu0 %v2544_v30  ;;  %1624 = vmatpush1.bf16.msra.mxu1 %v2545_v31  ;;  %v2634_v27 = vld [vmem:[#allocation2 + $0x2c4] ss:$16 sps:$4 sm:$0xff]   ;;  %v2637_v28 = vld [vmem:[#allocation2 + $0x2cc] ss:$16 sps:$4 sm:$0xff]   ;;  %v2632_v31 = vld [vmem:[#allocation2 + $0x2c0] ss:$16 sps:$4 sm:$0xff]  }
  0x46   :  { %1461 = vmatprep.subr.bf16.mxu0 %v2546_v32  ;;  %1625 = vmatprep.subr.bf16.mxu1 %v2548_v33  ;;  %v3017_v29 = vld [vmem:[%s3053_s0 + $0x8] sm:$0xff]  ;;  %v2640_v33 = vld [vmem:[#allocation2 + $0x2e4] ss:$16 sps:$4 sm:$0xff]  }
  0x47   :  { %v2157_v30 = vcombine.high %v3017_v29, %v3017_v29  ;;  %v2635_v32 = vld [vmem:[#allocation2 + $0x2c8] ss:$16 sps:$4 sm:$0xff]   ;;  %v2661_v46 = vld [vmem:[#allocation2 + $0x34c] ss:$16 sps:$4 sm:$0xff]  }
  0x48   :  { %v2659_v48 = vld [vmem:[#allocation2 + $0x348] ss:$16 sps:$4 sm:$0xff]  }
  0x49   :  { %1462 = vmatpush1.bf16.msra.mxu0 %v2550_v34  ;;  %1626 = vmatpush1.bf16.msra.mxu1 %v2551_v35  ;;  %v2643_v34 = vld [vmem:[#allocation2 + $0x2ec] ss:$16 sps:$4 sm:$0xff]   ;;  %v2638_v35 = vld [vmem:[#allocation2 + $0x2e0] ss:$16 sps:$4 sm:$0xff]  }
  0x4a   :  { %1463 = vmatprep.subr.bf16.mxu0 %v2552_v36  ;;  %1627 = vmatprep.subr.bf16.mxu1 %v2554_v37  ;;  %v2641_v36 = vld [vmem:[#allocation2 + $0x2e8] ss:$16 sps:$4 sm:$0xff]   ;;  %v2646_v37 = vld [vmem:[#allocation2 + $0x304] ss:$16 sps:$4 sm:$0xff]  }
  0x4d   :  { %1464 = vmatpush1.bf16.msra.mxu0 %v2556_v38  ;;  %1628 = vmatpush1.bf16.msra.mxu1 %v2557_v39  ;;  %v2649_v38 = vld [vmem:[#allocation2 + $0x30c] ss:$16 sps:$4 sm:$0xff]   ;;  %v2644_v39 = vld [vmem:[#allocation2 + $0x300] ss:$16 sps:$4 sm:$0xff]  }
  0x4e   :  { %1465 = vmatprep.subr.bf16.mxu0 %v2558_v40  ;;  %1629 = vmatprep.subr.bf16.mxu1 %v2560_v41  ;;  %v2647_v40 = vld [vmem:[#allocation2 + $0x308] ss:$16 sps:$4 sm:$0xff]   ;;  %v2652_v41 = vld [vmem:[#allocation2 + $0x324] ss:$16 sps:$4 sm:$0xff]  }
  0x51   :  { %1466 = vmatpush1.bf16.msra.mxu0 %v2562_v42  ;;  %1630 = vmatpush1.bf16.msra.mxu1 %v2563_v43  ;;  %v2655_v42 = vld [vmem:[#allocation2 + $0x32c] ss:$16 sps:$4 sm:$0xff]   ;;  %v2650_v43 = vld [vmem:[#allocation2 + $0x320] ss:$16 sps:$4 sm:$0xff]  }
  0x52   :  { %1467 = vmatprep.subr.bf16.mxu0 %v2564_v44  ;;  %1631 = vmatprep.subr.bf16.mxu1 %v2566_v45  ;;  %v2653_v44 = vld [vmem:[#allocation2 + $0x328] ss:$16 sps:$4 sm:$0xff]   ;;  %v2658_v45 = vld [vmem:[#allocation2 + $0x344] ss:$16 sps:$4 sm:$0xff]  }
  0x55   :  { %1468 = vmatpush1.bf16.msra.mxu0 %v2568_v47  ;;  %1632 = vmatpush1.bf16.msra.mxu1 %v2569_v49  ;;  %v2656_v47 = vld [vmem:[#allocation2 + $0x340] ss:$16 sps:$4 sm:$0xff]   ;;  %v2664_v49 = vld [vmem:[#allocation2 + $0x364] ss:$16 sps:$4 sm:$0xff]  }
  0x56   :  { %1469 = vmatprep.subr.bf16.mxu0 %v2570_v50  ;;  %1633 = vmatprep.subr.bf16.mxu1 %v2572_v51  ;;  %v2667_v50 = vld [vmem:[#allocation2 + $0x36c] ss:$16 sps:$4 sm:$0xff]   ;;  %v2662_v51 = vld [vmem:[#allocation2 + $0x360] ss:$16 sps:$4 sm:$0xff]  }
  0x59   :  { %1470 = vmatpush1.bf16.msra.mxu0 %v2574_v52  ;;  %1634 = vmatpush1.bf16.msra.mxu1 %v2575_v53  ;;  %v2665_v52 = vld [vmem:[#allocation2 + $0x368] ss:$16 sps:$4 sm:$0xff]   ;;  %v2670_v53 = vld [vmem:[#allocation2 + $0x384] ss:$16 sps:$4 sm:$0xff]  }
  0x5a   :  { %1471 = vmatprep.subr.bf16.mxu0 %v2576_v54  ;;  %1635 = vmatprep.subr.bf16.mxu1 %v2578_v55  ;;  %v2673_v54 = vld [vmem:[#allocation2 + $0x38c] ss:$16 sps:$4 sm:$0xff]   ;;  %v2668_v55 = vld [vmem:[#allocation2 + $0x380] ss:$16 sps:$4 sm:$0xff]  }
  0x5d   :  { %1472 = vmatpush1.bf16.msra.mxu0 %v2580_v56  ;;  %1636 = vmatpush1.bf16.msra.mxu1 %v2581_v57  ;;  %v2671_v56 = vld [vmem:[#allocation2 + $0x388] ss:$16 sps:$4 sm:$0xff]   ;;  %v2676_v57 = vld [vmem:[#allocation2 + $0x3a4] ss:$16 sps:$4 sm:$0xff]  }
  0x5e   :  { %1473 = vmatprep.subr.bf16.mxu0 %v2582_v58  ;;  %1637 = vmatprep.subr.bf16.mxu1 %v2584_v59  ;;  %v2679_v58 = vld [vmem:[#allocation2 + $0x3ac] ss:$16 sps:$4 sm:$0xff]   ;;  %v2674_v59 = vld [vmem:[#allocation2 + $0x3a0] ss:$16 sps:$4 sm:$0xff]  }
  0x61   :  { %1474 = vmatpush1.bf16.msra.mxu0 %v2586_v60  ;;  %1638 = vmatpush1.bf16.msra.mxu1 %v2587_v61  ;;  %v2677_v60 = vld [vmem:[#allocation2 + $0x3a8] ss:$16 sps:$4 sm:$0xff]   ;;  %v2682_v61 = vld [vmem:[#allocation2 + $0x3c4] ss:$16 sps:$4 sm:$0xff]  }
  0x62   :  { %1475 = vmatprep.subr.bf16.mxu0 %v2588_v62  ;;  %1639 = vmatprep.subr.bf16.mxu1 %v2590_v63  ;;  %v2685_v62 = vld [vmem:[#allocation2 + $0x3cc] ss:$16 sps:$4 sm:$0xff]   ;;  %v2680_v63 = vld [vmem:[#allocation2 + $0x3c0] ss:$16 sps:$4 sm:$0xff]  }
  0x65   :  { %1476 = vmatpush1.bf16.msra.mxu0 %v2592_v0  ;;  %1640 = vmatpush1.bf16.msra.mxu1 %v2593_v1  ;;  %v2683_v0 = vld [vmem:[#allocation2 + $0x3c8] ss:$16 sps:$4 sm:$0xff]   ;;  %v2688_v1 = vld [vmem:[#allocation2 + $0x3e4] ss:$16 sps:$4 sm:$0xff]  }
  0x66   :  { %1486 = vmatprep.subr.bf16.mxu0 %v2598_v2  ;;  %1650 = vmatprep.subr.bf16.mxu1 %v2601_v3  ;;  %v2691_v2 = vld [vmem:[#allocation2 + $0x3ec] ss:$16 sps:$4 sm:$0xff]   ;;  %v2686_v3 = vld [vmem:[#allocation2 + $0x3e0] ss:$16 sps:$4 sm:$0xff]  }
  0x68   :  { %1478 = vmatmul.mubr.bf16.vlgmr.msra.gmra.mrb[0].mxu0 %v2154_v4  ;;  %1642 = vmatmul.mubr.bf16.vlgmr.msra.gmra.mrb[0].mxu1 %v2154_v4  ;;  %v2689_v4 = vld [vmem:[#allocation2 + $0x3e8] ss:$16 sps:$4 sm:$0xff]  }
  0x69   :  { %1487 = vmatpush1.bf16.msra.mxu0 %v2596_v5  ;;  %1651 = vmatpush1.bf16.msra.mxu1 %v2599_v6  ;;  %v2696_v5 = vld [vmem:[#allocation2 + $0x404] ss:$16 sps:$4 sm:$0xff]   ;;  %v2699_v6 = vld [vmem:[#allocation2 + $0x40c] ss:$16 sps:$4 sm:$0xff]  }
  0x6a   :  { %1488 = vmatprep.subr.bf16.mxu0 %v2604_v7  ;;  %1652 = vmatprep.subr.bf16.mxu1 %v2607_v8  ;;  %v2156_v7 = vcombine.low %v3017_v29, %v3017_v29  ;;  %v2694_v8 = vld [vmem:[#allocation2 + $0x400] ss:$16 sps:$4 sm:$0xff]   ;;  %v2729_v29 = vld [vmem:[#allocation2 + $0x4ac] ss:$16 sps:$4 sm:$0xff]  }
  0x6b   :  { %1518 = vmatprep.mubr.bf16.mxu0 %v2157_v30  ;;  %1682 = vmatprep.mubr.bf16.mxu1 %v2157_v30  ;;  %v2724_v30 = vld [vmem:[#allocation2 + $0x4a0] ss:$16 sps:$4 sm:$0xff]  }
  0x6d   :  { %1489 = vmatpush1.bf16.msra.mxu0 %v2602_v9  ;;  %1653 = vmatpush1.bf16.msra.mxu1 %v2605_v10  ;;  %v2697_v9 = vld [vmem:[#allocation2 + $0x408] ss:$16 sps:$4 sm:$0xff]   ;;  %v2702_v10 = vld [vmem:[#allocation2 + $0x424] ss:$16 sps:$4 sm:$0xff]  }
  0x6e   :  { %1490 = vmatprep.subr.bf16.mxu0 %v2610_v11  ;;  %1654 = vmatprep.subr.bf16.mxu1 %v2613_v12  ;;  %v3026_v11 = vld [vmem:[%s3053_s0 + $0x10] sm:$0xff]  ;;  %v2705_v12 = vld [vmem:[#allocation2 + $0x42c] ss:$16 sps:$4 sm:$0xff]  }
  0x71   :  { %1491 = vmatpush1.bf16.msra.mxu0 %v2608_v13  ;;  %1655 = vmatpush1.bf16.msra.mxu1 %v2611_v14  ;;  %v2159_v13 = vcombine.high %v3026_v11, %v3026_v11  ;;  %v2700_v14 = vld [vmem:[#allocation2 + $0x420] ss:$16 sps:$4 sm:$0xff]  }
  0x72   :  { %1492 = vmatprep.subr.bf16.mxu0 %v2616_v15  ;;  %1656 = vmatprep.subr.bf16.mxu1 %v2619_v16  ;;  %v2703_v15 = vld [vmem:[#allocation2 + $0x428] ss:$16 sps:$4 sm:$0xff]   ;;  %v2708_v16 = vld [vmem:[#allocation2 + $0x444] ss:$16 sps:$4 sm:$0xff]  }
  0x75   :  { %1493 = vmatpush1.bf16.msra.mxu0 %v2614_v17  ;;  %1657 = vmatpush1.bf16.msra.mxu1 %v2617_v18  ;;  %v2711_v17 = vld [vmem:[#allocation2 + $0x44c] ss:$16 sps:$4 sm:$0xff]   ;;  %v2706_v18 = vld [vmem:[#allocation2 + $0x440] ss:$16 sps:$4 sm:$0xff]  }
  0x76   :  { %1494 = vmatprep.subr.bf16.mxu0 %v2622_v19  ;;  %1658 = vmatprep.subr.bf16.mxu1 %v2625_v20  ;;  %v2709_v19 = vld [vmem:[#allocation2 + $0x448] ss:$16 sps:$4 sm:$0xff]   ;;  %v2714_v20 = vld [vmem:[#allocation2 + $0x464] ss:$16 sps:$4 sm:$0xff]  }
  0x79   :  { %1495 = vmatpush1.bf16.msra.mxu0 %v2620_v21  ;;  %1659 = vmatpush1.bf16.msra.mxu1 %v2623_v22  ;;  %v2717_v21 = vld [vmem:[#allocation2 + $0x46c] ss:$16 sps:$4 sm:$0xff]   ;;  %v2712_v22 = vld [vmem:[#allocation2 + $0x460] ss:$16 sps:$4 sm:$0xff]  }
  0x7a   :  { %1496 = vmatprep.subr.bf16.mxu0 %v2628_v23  ;;  %1660 = vmatprep.subr.bf16.mxu1 %v2631_v24  ;;  %v2715_v23 = vld [vmem:[#allocation2 + $0x468] ss:$16 sps:$4 sm:$0xff]   ;;  %v2720_v24 = vld [vmem:[#allocation2 + $0x484] ss:$16 sps:$4 sm:$0xff]  }
  0x7d   :  { %1497 = vmatpush1.bf16.msra.mxu0 %v2626_v25  ;;  %1661 = vmatpush1.bf16.msra.mxu1 %v2629_v26  ;;  %v2723_v25 = vld [vmem:[#allocation2 + $0x48c] ss:$16 sps:$4 sm:$0xff]   ;;  %v2718_v26 = vld [vmem:[#allocation2 + $0x480] ss:$16 sps:$4 sm:$0xff]  }
  0x7e   :  { %1498 = vmatprep.subr.bf16.mxu0 %v2634_v27  ;;  %1662 = vmatprep.subr.bf16.mxu1 %v2637_v28  ;;  %v2721_v27 = vld [vmem:[#allocation2 + $0x488] ss:$16 sps:$4 sm:$0xff]   ;;  %v2726_v28 = vld [vmem:[#allocation2 + $0x4a4] ss:$16 sps:$4 sm:$0xff]  }
  0x81   :  { %1499 = vmatpush1.bf16.msra.mxu0 %v2632_v31  ;;  %1663 = vmatpush1.bf16.msra.mxu1 %v2635_v32  ;;  %v2727_v31 = vld [vmem:[#allocation2 + $0x4a8] ss:$16 sps:$4 sm:$0xff]   ;;  %v2732_v32 = vld [vmem:[#allocation2 + $0x4c4] ss:$16 sps:$4 sm:$0xff]  }
  0x82   :  { %1500 = vmatprep.subr.bf16.mxu0 %v2640_v33  ;;  %1664 = vmatprep.subr.bf16.mxu1 %v2643_v34  ;;  %v2735_v33 = vld [vmem:[#allocation2 + $0x4cc] ss:$16 sps:$4 sm:$0xff]   ;;  %v2730_v34 = vld [vmem:[#allocation2 + $0x4c0] ss:$16 sps:$4 sm:$0xff]  }
  0x85   :  { %1501 = vmatpush1.bf16.msra.mxu0 %v2638_v35  ;;  %1665 = vmatpush1.bf16.msra.mxu1 %v2641_v36  ;;  %v2733_v35 = vld [vmem:[#allocation2 + $0x4c8] ss:$16 sps:$4 sm:$0xff]   ;;  %v2738_v36 = vld [vmem:[#allocation2 + $0x4e4] ss:$16 sps:$4 sm:$0xff]  }
  0x86   :  { %1502 = vmatprep.subr.bf16.mxu0 %v2646_v37  ;;  %1666 = vmatprep.subr.bf16.mxu1 %v2649_v38  ;;  %v2741_v37 = vld [vmem:[#allocation2 + $0x4ec] ss:$16 sps:$4 sm:$0xff]   ;;  %v2736_v38 = vld [vmem:[#allocation2 + $0x4e0] ss:$16 sps:$4 sm:$0xff]  }
  0x89   :  { %1503 = vmatpush1.bf16.msra.mxu0 %v2644_v39  ;;  %1667 = vmatpush1.bf16.msra.mxu1 %v2647_v40  ;;  %v2739_v39 = vld [vmem:[#allocation2 + $0x4e8] ss:$16 sps:$4 sm:$0xff]   ;;  %v2744_v40 = vld [vmem:[#allocation2 + $0x504] ss:$16 sps:$4 sm:$0xff]  }
  0x8a   :  { %1504 = vmatprep.subr.bf16.mxu0 %v2652_v41  ;;  %1668 = vmatprep.subr.bf16.mxu1 %v2655_v42  ;;  %v2747_v41 = vld [vmem:[#allocation2 + $0x50c] ss:$16 sps:$4 sm:$0xff]   ;;  %v2742_v42 = vld [vmem:[#allocation2 + $0x500] ss:$16 sps:$4 sm:$0xff]  }
  0x8d   :  { %1505 = vmatpush1.bf16.msra.mxu0 %v2650_v43  ;;  %1669 = vmatpush1.bf16.msra.mxu1 %v2653_v44  ;;  %v2745_v43 = vld [vmem:[#allocation2 + $0x508] ss:$16 sps:$4 sm:$0xff]   ;;  %v2750_v44 = vld [vmem:[#allocation2 + $0x524] ss:$16 sps:$4 sm:$0xff]  }
  0x8e   :  { %1506 = vmatprep.subr.bf16.mxu0 %v2658_v45  ;;  %1670 = vmatprep.subr.bf16.mxu1 %v2661_v46  ;;  %v2753_v45 = vld [vmem:[#allocation2 + $0x52c] ss:$16 sps:$4 sm:$0xff]   ;;  %v2748_v46 = vld [vmem:[#allocation2 + $0x520] ss:$16 sps:$4 sm:$0xff]  }
  0x91   :  { %1507 = vmatpush1.bf16.msra.mxu0 %v2656_v47  ;;  %1671 = vmatpush1.bf16.msra.mxu1 %v2659_v48  ;;  %v2751_v47 = vld [vmem:[#allocation2 + $0x528] ss:$16 sps:$4 sm:$0xff]   ;;  %v2756_v48 = vld [vmem:[#allocation2 + $0x544] ss:$16 sps:$4 sm:$0xff]  }
  0x92   :  { %1508 = vmatprep.subr.bf16.mxu0 %v2664_v49  ;;  %1672 = vmatprep.subr.bf16.mxu1 %v2667_v50  ;;  %v2759_v49 = vld [vmem:[#allocation2 + $0x54c] ss:$16 sps:$4 sm:$0xff]   ;;  %v2754_v50 = vld [vmem:[#allocation2 + $0x540] ss:$16 sps:$4 sm:$0xff]  }
  0x95   :  { %1509 = vmatpush1.bf16.msra.mxu0 %v2662_v51  ;;  %1673 = vmatpush1.bf16.msra.mxu1 %v2665_v52  ;;  %v2757_v51 = vld [vmem:[#allocation2 + $0x548] ss:$16 sps:$4 sm:$0xff]   ;;  %v2762_v52 = vld [vmem:[#allocation2 + $0x564] ss:$16 sps:$4 sm:$0xff]  }
  0x96   :  { %1510 = vmatprep.subr.bf16.mxu0 %v2670_v53  ;;  %1674 = vmatprep.subr.bf16.mxu1 %v2673_v54  ;;  %v2765_v53 = vld [vmem:[#allocation2 + $0x56c] ss:$16 sps:$4 sm:$0xff]   ;;  %v2760_v54 = vld [vmem:[#allocation2 + $0x560] ss:$16 sps:$4 sm:$0xff]  }
  0x99   :  { %1511 = vmatpush1.bf16.msra.mxu0 %v2668_v55  ;;  %1675 = vmatpush1.bf16.msra.mxu1 %v2671_v56  ;;  %v2763_v55 = vld [vmem:[#allocation2 + $0x568] ss:$16 sps:$4 sm:$0xff]   ;;  %v2768_v56 = vld [vmem:[#allocation2 + $0x584] ss:$16 sps:$4 sm:$0xff]  }
  0x9a   :  { %1512 = vmatprep.subr.bf16.mxu0 %v2676_v57  ;;  %1676 = vmatprep.subr.bf16.mxu1 %v2679_v58  ;;  %v2771_v57 = vld [vmem:[#allocation2 + $0x58c] ss:$16 sps:$4 sm:$0xff]   ;;  %v2766_v58 = vld [vmem:[#allocation2 + $0x580] ss:$16 sps:$4 sm:$0xff]  }
  0x9d   :  { %1513 = vmatpush1.bf16.msra.mxu0 %v2674_v59  ;;  %1677 = vmatpush1.bf16.msra.mxu1 %v2677_v60  ;;  %v2769_v59 = vld [vmem:[#allocation2 + $0x588] ss:$16 sps:$4 sm:$0xff]   ;;  %v2774_v60 = vld [vmem:[#allocation2 + $0x5a4] ss:$16 sps:$4 sm:$0xff]  }
  0x9e   :  { %1514 = vmatprep.subr.bf16.mxu0 %v2682_v61  ;;  %1678 = vmatprep.subr.bf16.mxu1 %v2685_v62  ;;  %v2777_v61 = vld [vmem:[#allocation2 + $0x5ac] ss:$16 sps:$4 sm:$0xff]   ;;  %v2772_v62 = vld [vmem:[#allocation2 + $0x5a0] ss:$16 sps:$4 sm:$0xff]  }
  0xa1   :  { %1515 = vmatpush1.bf16.msra.mxu0 %v2680_v63  ;;  %1679 = vmatpush1.bf16.msra.mxu1 %v2683_v0  ;;  %v2775_v63 = vld [vmem:[#allocation2 + $0x5a8] ss:$16 sps:$4 sm:$0xff]   ;;  %v2780_v0 = vld [vmem:[#allocation2 + $0x5c4] ss:$16 sps:$4 sm:$0xff]  }
  0xa2   :  { %1516 = vmatprep.subr.bf16.mxu0 %v2688_v1  ;;  %1680 = vmatprep.subr.bf16.mxu1 %v2691_v2  ;;  %v2783_v1 = vld [vmem:[#allocation2 + $0x5cc] ss:$16 sps:$4 sm:$0xff]   ;;  %v2778_v2 = vld [vmem:[#allocation2 + $0x5c0] ss:$16 sps:$4 sm:$0xff]  }
  0xa5   :  { %1517 = vmatpush1.bf16.msra.mxu0 %v2686_v3  ;;  %1681 = vmatpush1.bf16.msra.mxu1 %v2689_v4  ;;  %v2781_v3 = vld [vmem:[#allocation2 + $0x5c8] ss:$16 sps:$4 sm:$0xff]   ;;  %v2786_v4 = vld [vmem:[#allocation2 + $0x5e4] ss:$16 sps:$4 sm:$0xff]  }
  0xa6   :  { %1527 = vmatprep.subr.bf16.mxu0 %v2696_v5  ;;  %1691 = vmatprep.subr.bf16.mxu1 %v2699_v6  ;;  %v2789_v5 = vld [vmem:[#allocation2 + $0x5ec] ss:$16 sps:$4 sm:$0xff]   ;;  %v2784_v6 = vld [vmem:[#allocation2 + $0x5e0] ss:$16 sps:$4 sm:$0xff]  }
  0xa8   :  { %1519 = vmatmul.mubr.bf16.vlgmr.msra.gmra.mrb[0].mxu0 %v2156_v7  ;;  %1683 = vmatmul.mubr.bf16.vlgmr.msra.gmra.mrb[0].mxu1 %v2156_v7  ;;  %v2787_v7 = vld [vmem:[#allocation2 + $0x5e8] ss:$16 sps:$4 sm:$0xff]  }
  0xa9   :  { %1528 = vmatpush1.bf16.msra.mxu0 %v2694_v8  ;;  %1692 = vmatpush1.bf16.msra.mxu1 %v2697_v9  ;;  %v2794_v8 = vld [vmem:[#allocation2 + $0x604] ss:$16 sps:$4 sm:$0xff]   ;;  %v2797_v9 = vld [vmem:[#allocation2 + $0x60c] ss:$16 sps:$4 sm:$0xff]  }
  0xaa   :  { %1529 = vmatprep.subr.bf16.mxu0 %v2702_v10  ;;  %1693 = vmatprep.subr.bf16.mxu1 %v2705_v12  ;;  %v2158_v10 = vcombine.low %v3026_v11, %v3026_v11  ;;  %v2792_v12 = vld [vmem:[#allocation2 + $0x600] ss:$16 sps:$4 sm:$0xff]  }
  0xab   :  { %1559 = vmatprep.mubr.bf16.mxu0 %v2159_v13  ;;  %1723 = vmatprep.mubr.bf16.mxu1 %v2159_v13  ;;  %v2795_v13 = vld [vmem:[#allocation2 + $0x608] ss:$16 sps:$4 sm:$0xff]   ;;  %v2804_v11 = vld [vmem:[#allocation2 + $0x640] ss:$16 sps:$4 sm:$0xff]  }
  0xad   :  { %1530 = vmatpush1.bf16.msra.mxu0 %v2700_v14  ;;  %1694 = vmatpush1.bf16.msra.mxu1 %v2703_v15  ;;  %v2800_v14 = vld [vmem:[#allocation2 + $0x624] ss:$16 sps:$4 sm:$0xff]   ;;  %v2803_v15 = vld [vmem:[#allocation2 + $0x62c] ss:$16 sps:$4 sm:$0xff]  }
  0xae   :  { %1531 = vmatprep.subr.bf16.mxu0 %v2708_v16  ;;  %1695 = vmatprep.subr.bf16.mxu1 %v2711_v17  ;;  %v2798_v16 = vld [vmem:[#allocation2 + $0x620] ss:$16 sps:$4 sm:$0xff]   ;;  %v2801_v17 = vld [vmem:[#allocation2 + $0x628] ss:$16 sps:$4 sm:$0xff]  }
  0xb1   :  { %1532 = vmatpush1.bf16.msra.mxu0 %v2706_v18  ;;  %1696 = vmatpush1.bf16.msra.mxu1 %v2709_v19  ;;  %v2806_v18 = vld [vmem:[#allocation2 + $0x644] ss:$16 sps:$4 sm:$0xff]   ;;  %v2809_v19 = vld [vmem:[#allocation2 + $0x64c] ss:$16 sps:$4 sm:$0xff]  }
  0xb2   :  { %1533 = vmatprep.subr.bf16.mxu0 %v2714_v20  ;;  %1697 = vmatprep.subr.bf16.mxu1 %v2717_v21  ;;  %v2955_v20 = vmov 0   ;;  %v2807_v21 = vld [vmem:[#allocation2 + $0x648] ss:$16 sps:$4 sm:$0xff]  }
  0xb5   :  { %1534 = vmatpush1.bf16.msra.mxu0 %v2712_v22  ;;  %1698 = vmatpush1.bf16.msra.mxu1 %v2715_v23  ;;  %v2812_v22 = vld [vmem:[#allocation2 + $0x664] ss:$16 sps:$4 sm:$0xff]   ;;  %v2815_v23 = vld [vmem:[#allocation2 + $0x66c] ss:$16 sps:$4 sm:$0xff]  }
  0xb6   :  { %1535 = vmatprep.subr.bf16.mxu0 %v2720_v24  ;;  %1699 = vmatprep.subr.bf16.mxu1 %v2723_v25  ;;  %v2810_v24 = vld [vmem:[#allocation2 + $0x660] ss:$16 sps:$4 sm:$0xff]   ;;  %v2813_v25 = vld [vmem:[#allocation2 + $0x668] ss:$16 sps:$4 sm:$0xff]  }
  0xb9   :  { %1536 = vmatpush1.bf16.msra.mxu0 %v2718_v26  ;;  %1700 = vmatpush1.bf16.msra.mxu1 %v2721_v27  ;;  %v2818_v26 = vld [vmem:[#allocation2 + $0x684] ss:$16 sps:$4 sm:$0xff]   ;;  %v2821_v27 = vld [vmem:[#allocation2 + $0x68c] ss:$16 sps:$4 sm:$0xff]  }
  0xba   :  { %1537 = vmatprep.subr.bf16.mxu0 %v2726_v28  ;;  %1701 = vmatprep.subr.bf16.mxu1 %v2729_v29  ;;  %v2816_v28 = vld [vmem:[#allocation2 + $0x680] ss:$16 sps:$4 sm:$0xff]   ;;  %v2819_v29 = vld [vmem:[#allocation2 + $0x688] ss:$16 sps:$4 sm:$0xff]  }
  0xbd   :  { %1538 = vmatpush1.bf16.msra.mxu0 %v2724_v30  ;;  %1702 = vmatpush1.bf16.msra.mxu1 %v2727_v31  ;;  %v2824_v30 = vld [vmem:[#allocation2 + $0x6a4] ss:$16 sps:$4 sm:$0xff]   ;;  %v2827_v31 = vld [vmem:[#allocation2 + $0x6ac] ss:$16 sps:$4 sm:$0xff]  }
  0xbe   :  { %1539 = vmatprep.subr.bf16.mxu0 %v2732_v32  ;;  %1703 = vmatprep.subr.bf16.mxu1 %v2735_v33  ;;  %v2822_v32 = vld [vmem:[#allocation2 + $0x6a0] ss:$16 sps:$4 sm:$0xff]   ;;  %v2825_v33 = vld [vmem:[#allocation2 + $0x6a8] ss:$16 sps:$4 sm:$0xff]  }
  0xc1   :  { %1540 = vmatpush1.bf16.msra.mxu0 %v2730_v34  ;;  %1704 = vmatpush1.bf16.msra.mxu1 %v2733_v35  ;;  %v2830_v34 = vld [vmem:[#allocation2 + $0x6c4] ss:$16 sps:$4 sm:$0xff]   ;;  %v2833_v35 = vld [vmem:[#allocation2 + $0x6cc] ss:$16 sps:$4 sm:$0xff]  }
  0xc2   :  { %1541 = vmatprep.subr.bf16.mxu0 %v2738_v36  ;;  %1705 = vmatprep.subr.bf16.mxu1 %v2741_v37  ;;  %v2828_v36 = vld [vmem:[#allocation2 + $0x6c0] ss:$16 sps:$4 sm:$0xff]   ;;  %v2831_v37 = vld [vmem:[#allocation2 + $0x6c8] ss:$16 sps:$4 sm:$0xff]  }
  0xc5   :  { %1542 = vmatpush1.bf16.msra.mxu0 %v2736_v38  ;;  %1706 = vmatpush1.bf16.msra.mxu1 %v2739_v39  ;;  %v2836_v38 = vld [vmem:[#allocation2 + $0x6e4] ss:$16 sps:$4 sm:$0xff]   ;;  %v2839_v39 = vld [vmem:[#allocation2 + $0x6ec] ss:$16 sps:$4 sm:$0xff]  }
  0xc6   :  { %1543 = vmatprep.subr.bf16.mxu0 %v2744_v40  ;;  %1707 = vmatprep.subr.bf16.mxu1 %v2747_v41  ;;  %v2834_v40 = vld [vmem:[#allocation2 + $0x6e0] ss:$16 sps:$4 sm:$0xff]   ;;  %v2837_v41 = vld [vmem:[#allocation2 + $0x6e8] ss:$16 sps:$4 sm:$0xff]  }
  0xc9   :  { %1544 = vmatpush1.bf16.msra.mxu0 %v2742_v42  ;;  %1708 = vmatpush1.bf16.msra.mxu1 %v2745_v43  ;;  %v2841_v42 = vld [vmem:[#allocation5 + $0x40] sm:$0xff]  }
  0xca   :  { %1545 = vmatprep.subr.bf16.mxu0 %v2750_v44  ;;  %1709 = vmatprep.subr.bf16.mxu1 %v2753_v45  ;;  %v2842_v43 = vld [vmem:[#allocation5 + $0xc0] sm:$0xff]   ;;  %v2840_v44 = vld [vmem:[%s3053_s0 + $0x18] ss:$0 sps:$4 sm:$0xff]  }
  0xcb   :  { %v2843_v45 = vld [vmem:[#allocation5] sm:$0xff]  }
  0xcd   :  { %1546 = vmatpush1.bf16.msra.mxu0 %v2748_v46  ;;  %1710 = vmatpush1.bf16.msra.mxu1 %v2751_v47  ;;  %v2844_v46 = vld [vmem:[#allocation5 + $0x80] sm:$0xff]   ;;  %v2845_v47 = vld [vmem:[#allocation5 + $0x48] sm:$0xff]  }
  0xce   :  { %1547 = vmatprep.subr.bf16.mxu0 %v2756_v48  ;;  %1711 = vmatprep.subr.bf16.mxu1 %v2759_v49  ;;  %v2846_v48 = vld [vmem:[#allocation5 + $0xc8] sm:$0xff]  }
  0xcf   :  { %v2847_v49 = vld [vmem:[#allocation5 + $0x8] sm:$0xff]  }
  0xd1   :  { %1548 = vmatpush1.bf16.msra.mxu0 %v2754_v50  ;;  %1712 = vmatpush1.bf16.msra.mxu1 %v2757_v51  ;;  %v2848_v50 = vld [vmem:[#allocation5 + $0x88] sm:$0xff]   ;;  %v2849_v51 = vld [vmem:[#allocation5 + $0x50] sm:$0xff]  }
  0xd2   :  { %1549 = vmatprep.subr.bf16.mxu0 %v2762_v52  ;;  %1713 = vmatprep.subr.bf16.mxu1 %v2765_v53  ;;  %v2850_v52 = vld [vmem:[#allocation5 + $0xd0] sm:$0xff]  }
  0xd3   :  { %v2851_v53 = vld [vmem:[#allocation5 + $0x10] sm:$0xff]  }
  0xd5   :  { %1550 = vmatpush1.bf16.msra.mxu0 %v2760_v54  ;;  %1714 = vmatpush1.bf16.msra.mxu1 %v2763_v55  ;;  %v2852_v54 = vld [vmem:[#allocation5 + $0x90] sm:$0xff]   ;;  %v2853_v55 = vld [vmem:[#allocation5 + $0x58] sm:$0xff]  }
  0xd6   :  { %1551 = vmatprep.subr.bf16.mxu0 %v2768_v56  ;;  %1715 = vmatprep.subr.bf16.mxu1 %v2771_v57  ;;  %v2854_v56 = vld [vmem:[#allocation5 + $0xd8] sm:$0xff]  }
  0xd7   :  { %v2855_v57 = vld [vmem:[#allocation5 + $0x18] sm:$0xff]  }
  0xd9   :  { %1552 = vmatpush1.bf16.msra.mxu0 %v2766_v58  ;;  %1716 = vmatpush1.bf16.msra.mxu1 %v2769_v59  ;;  %v2856_v58 = vld [vmem:[#allocation5 + $0x98] sm:$0xff]   ;;  %v2857_v59 = vld [vmem:[#allocation5 + $0x60] sm:$0xff]  }
  0xda   :  { %1553 = vmatprep.subr.bf16.mxu0 %v2774_v60  ;;  %1717 = vmatprep.subr.bf16.mxu1 %v2777_v61  ;;  %v2858_v60 = vld [vmem:[#allocation5 + $0xe0] sm:$0xff]  }
  0xdb   :  { %v2859_v61 = vld [vmem:[#allocation5 + $0x20] sm:$0xff]  }
  0xdd   :  { %1554 = vmatpush1.bf16.msra.mxu0 %v2772_v62  ;;  %1718 = vmatpush1.bf16.msra.mxu1 %v2775_v63  ;;  %v2860_v62 = vld [vmem:[#allocation5 + $0xa0] sm:$0xff]   ;;  %v2861_v63 = vld [vmem:[#allocation5 + $0x68] sm:$0xff]  }
  0xde   :  { %1555 = vmatprep.subr.bf16.mxu0 %v2780_v0  ;;  %1719 = vmatprep.subr.bf16.mxu1 %v2783_v1  ;;  %v2862_v0 = vld [vmem:[#allocation5 + $0xe8] sm:$0xff]  }
  0xdf   :  { %v2863_v1 = vld [vmem:[#allocation5 + $0x28] sm:$0xff]  }
  0xe1   :  { %1556 = vmatpush1.bf16.msra.mxu0 %v2778_v2  ;;  %1720 = vmatpush1.bf16.msra.mxu1 %v2781_v3  ;;  %v2864_v2 = vld [vmem:[#allocation5 + $0xa8] sm:$0xff]   ;;  %v2865_v3 = vld [vmem:[#allocation5 + $0x70] sm:$0xff]  }
  0xe2   :  { %1557 = vmatprep.subr.bf16.mxu0 %v2786_v4  ;;  %1721 = vmatprep.subr.bf16.mxu1 %v2789_v5  ;;  %v2866_v4 = vld [vmem:[#allocation5 + $0xf0] sm:$0xff]  }
  0xe3   :  { %v2867_v5 = vld [vmem:[#allocation5 + $0x30] sm:$0xff]  }
  0xe5   :  { %1558 = vmatpush1.bf16.msra.mxu0 %v2784_v6  ;;  %1722 = vmatpush1.bf16.msra.mxu1 %v2787_v7  ;;  %v2868_v6 = vld [vmem:[#allocation5 + $0xb0] sm:$0xff]   ;;  %v2869_v7 = vld [vmem:[#allocation5 + $0x78] sm:$0xff]  }
  0xe6   :  { %1568 = vmatprep.subr.bf16.mxu0 %v2794_v8  ;;  %1732 = vmatprep.subr.bf16.mxu1 %v2797_v9  ;;  %v2870_v8 = vld [vmem:[#allocation5 + $0xf8] sm:$0xff]  }
  0xe7   :  { %v2871_v9 = vld [vmem:[#allocation5 + $0x38] sm:$0xff]  }
  0xe8   :  { %1560 = vmatmul.mubr.bf16.vlgmr.msra.gmra.mrb[0].mxu0 %v2158_v10  ;;  %1724 = vmatmul.mubr.bf16.vlgmr.msra.gmra.mrb[0].mxu1 %v2158_v10  ;;  %v2872_v10 = vld [vmem:[#allocation5 + $0xb8] sm:$0xff]  }
  0xe9   :  { %1569 = vmatpush1.bf16.msra.mxu0 %v2792_v12  ;;  %1733 = vmatpush1.bf16.msra.mxu1 %v2795_v13  ;;  %v280_v12 = vlaneseq }
  0xea   :  { %1570 = vmatprep.subr.bf16.mxu0 %v2800_v14  ;;  %1734 = vmatprep.subr.bf16.mxu1 %v2803_v15 }
  0xeb   :  { %1600 = vmatprep.mubr.bf16.mxu0 %v2955_v20  ;;  %1764 = vmatprep.mubr.bf16.mxu1 %v2955_v20  ;;  %v281_v13 = vshrl.u32 %v280_v12, 7 }
  0xed   :  { %1571 = vmatpush1.bf16.msra.mxu0 %v2798_v16  ;;  %1735 = vmatpush1.bf16.msra.mxu1 %v2801_v17  ;;  %v282_v14 = vsub.s32 0, %v281_v13  ;;  %v290_v15 = vsub.s32 2, %v281_v13  ;;  %v278_v16 = vld [vmem:[%s3055_s2] sm:$0xf]  ;;  %v286_v17 = vsub.s32 1, %v281_v13 }
  0xee   :  { %1572 = vmatprep.subr.bf16.mxu0 %v2806_v18  ;;  %1736 = vmatprep.subr.bf16.mxu1 %v2809_v19  ;;  %v294_v18 = vsub.s32 3, %v281_v13 }
  0xef   :  { %v283_v19 = vrot.slane %v278_v16, %v282_v14  ;;  %v291_v20 = vrot.slane %v278_v16, %v290_v15 }
  0xf1   :  { %1573 = vmatpush1.bf16.msra.mxu0 %v2804_v11  ;;  %1737 = vmatpush1.bf16.msra.mxu1 %v2807_v21  ;;  %v287_v11 = vrot.slane %v278_v16, %v286_v17  ;;  %v295_v21 = vrot.slane %v278_v16, %v294_v18 }
  0xf2   :  { %1574 = vmatprep.subr.bf16.mxu0 %v2812_v22  ;;  %1738 = vmatprep.subr.bf16.mxu1 %v2815_v23 }
  0xf5   :  { %1575 = vmatpush1.bf16.msra.mxu0 %v2810_v24  ;;  %1739 = vmatpush1.bf16.msra.mxu1 %v2813_v25 }
  0xf6   :  { %1576 = vmatprep.subr.bf16.mxu0 %v2818_v26  ;;  %1740 = vmatprep.subr.bf16.mxu1 %v2821_v27 }
  0xf9   :  { %1577 = vmatpush1.bf16.msra.mxu0 %v2816_v28  ;;  %1741 = vmatpush1.bf16.msra.mxu1 %v2819_v29 }
  0xfa   :  { %1578 = vmatprep.subr.bf16.mxu0 %v2824_v30  ;;  %1742 = vmatprep.subr.bf16.mxu1 %v2827_v31 }
  0xfd   :  { %1579 = vmatpush1.bf16.msra.mxu0 %v2822_v32  ;;  %1743 = vmatpush1.bf16.msra.mxu1 %v2825_v33 }
  0xfe   :  { %1580 = vmatprep.subr.bf16.mxu0 %v2830_v34  ;;  %1744 = vmatprep.subr.bf16.mxu1 %v2833_v35 }
 0x101   :  { %1581 = vmatpush1.bf16.msra.mxu0 %v2828_v36  ;;  %1745 = vmatpush1.bf16.msra.mxu1 %v2831_v37 }
 0x102   :  { %1582 = vmatprep.subr.bf16.mxu0 %v2836_v38  ;;  %1746 = vmatprep.subr.bf16.mxu1 %v2839_v39 }
 0x105   :  { %1583 = vmatpush1.bf16.msra.mxu0 %v2834_v40  ;;  %1747 = vmatpush1.bf16.msra.mxu1 %v2837_v41 }
 0x106   :  { %2418 = vmatprep.subr.bf16.mxu0 %v2841_v42  ;;  %2440 = vmatprep.subr.bf16.mxu1 %v2842_v43 }
 0x108   :  { %1601 = vmatmul.mubr.bf16.vlgmr.msra.gmra.mrb[0].mxu0 %v2840_v44  ;;  %1765 = vmatmul.mubr.bf16.vlgmr.msra.gmra.mrb[0].mxu1 %v2840_v44 }
 0x109   :  { %2419 = vmatpush3.bf16.msra.mxu0 %v2843_v45  ;;  %2441 = vmatpush3.bf16.msra.mxu1 %v2844_v46 }
 0x10a   :  { %2420 = vmatprep.subr.bf16.mxu0 %v2845_v47  ;;  %2442 = vmatprep.subr.bf16.mxu1 %v2846_v48  ;;  %v2385_v48 = vld [vmem:[%s3057_s4] ss:$0 sm:$0xff]  ;;  %s2956_s4 = smov [#allocation7]  }
 0x10b   :  { %s2144_s29 = sshll.u32 %s2956_s4, 4  ;;  %s2145_s29 = int_to_ptr.vmem [resolvable:$true] %s2144_s29 }
 0x10c   :  { %s2921_s30 = scalar_lea.vmem %s2145_s29, 128  ;;  %p2926_p3 = scmp.lt.s32.totalorder %s2145_s29, %s2145_s29 }
 0x10d   :  { %2421 = vmatpush3.bf16.msra.mxu0 %v2847_v49  ;;  %2443 = vmatpush3.bf16.msra.mxu1 %v2848_v50  ;;  %p2922_p2 = scmp.ne.s32.totalorder %s2145_s29, %s2921_s30  ;;  %p2927_p4 = scmp.lt.s32.totalorder %s2921_s30, %s2921_s30 }
 0x10e   :  { %2422 = vmatprep.subr.bf16.mxu0 %v2849_v51  ;;  %2444 = vmatprep.subr.bf16.mxu1 %v2850_v52 }
 0x10f   :  { %p2928_p5 = por %p2927_p4, %p2926_p3 }
 0x111   :  { %2423 = vmatpush3.bf16.msra.mxu0 %v2851_v53  ;;  %2445 = vmatpush3.bf16.msra.mxu1 %v2852_v54  ;;  %p2929_p6 = pnand %p2928_p5, %p2922_p2 }
 0x112   :  { %2424 = vmatprep.subr.bf16.mxu0 %v2853_v55  ;;  %2446 = vmatprep.subr.bf16.mxu1 %v2854_v56 }
 0x115   :  { %2425 = vmatpush3.bf16.msra.mxu0 %v2855_v57  ;;  %2447 = vmatpush3.bf16.msra.mxu1 %v2856_v58 }
 0x116   :  { %2426 = vmatprep.subr.bf16.mxu0 %v2857_v59  ;;  %2448 = vmatprep.subr.bf16.mxu1 %v2858_v60 }
 0x119   :  { %2427 = vmatpush3.bf16.msra.mxu0 %v2859_v61  ;;  %2449 = vmatpush3.bf16.msra.mxu1 %v2860_v62 }
 0x11a   :  { %2428 = vmatprep.subr.bf16.mxu0 %v2861_v63  ;;  %2450 = vmatprep.subr.bf16.mxu1 %v2862_v0 }
 0x11d   :  { %2429 = vmatpush3.bf16.msra.mxu0 %v2863_v1  ;;  %2451 = vmatpush3.bf16.msra.mxu1 %v2864_v2 }
 0x11e   :  { %2430 = vmatprep.subr.bf16.mxu0 %v2865_v3  ;;  %2452 = vmatprep.subr.bf16.mxu1 %v2866_v4 }
 0x121   :  { %2431 = vmatpush3.bf16.msra.mxu0 %v2867_v5  ;;  %2453 = vmatpush3.bf16.msra.mxu1 %v2868_v6 }
 0x122   :  { %2432 = vmatprep.subr.bf16.mxu0 %v2869_v7  ;;  %2454 = vmatprep.subr.bf16.mxu1 %v2870_v8 }
 0x125   :  { %2433 = vmatpush3.bf16.msra.mxu0 %v2871_v9  ;;  %2455 = vmatpush3.bf16.msra.mxu1 %v2872_v10 }
 0x1db   :  { %v1602_v22 = vpop.f32.mrb[0].mxu0  ;;  %v1766_v23 = vpop.f32.mrb[0].mxu1 }
 0x1dc   :  { %v2462_v24 = vadd.f32 %v1602_v22, %v283_v19  ;;  %v2464_v25 = vadd.f32 %v1766_v23, %v291_v20  ;;  %v1604_v26 = vpop.f32.mrb[1].mxu0  ;;  %v1768_v27 = vpop.f32.mrb[1].mxu1 }
 0x1dd   :  { %v2463_v28 = vadd.f32 %v1604_v26, %v287_v11  ;;  %v2465_v29 = vadd.f32 %v1768_v27, %v295_v21  ;;  %v1606_v30 = vpop.f32.mrb[2].mxu0  ;;  %v1770_v31 = vpop.f32.mrb[2].mxu1 }
 0x1de   :  { %v1773_v32 = vmul.f32 0.01, %v2462_v24  ;;  %v1775_v33 = vmul.f32 0.01, %v2464_v25  ;;  %v1607_v34 = vpop.f32.mrb[3].mxu0  ;;  %v1771_v35 = vpop.f32.mrb[3].mxu1 }
 0x1df   :  { %v1774_v36 = vmul.f32 0.01, %v2463_v28  ;;  %v1776_v37 = vmul.f32 0.01, %v2465_v29 }
 0x1e0   :  { %v1777_v38 = vmax.f32 %v2462_v24, %v1773_v32  ;;  %v1779_v39 = vmax.f32 %v2464_v25, %v1775_v33 }
 0x1e1   :  { %v1778_v40 = vmax.f32 %v2463_v28, %v1774_v36  ;;  %v1780_v41 = vmax.f32 %v2465_v29, %v1776_v37 }
 0x1e2   :  { %v1781_v44 = vpack.c.bf16 %v1777_v38, %v1777_v38  ;;  %v1783_v45 = vpack.c.bf16 %v1779_v39, %v1779_v39 }
 0x1e3   :  { %v1782_v42 = vpack.c.bf16 %v1778_v40, %v1778_v40  ;;  %v1784_v43 = vpack.c.bf16 %v1780_v41, %v1780_v41 }
 0x1e5   :  { %2080 = vmatprep.mubr.bf16.mxu0 %v1782_v42  ;;  %2120 = vmatprep.mubr.bf16.mxu1 %v1784_v43 }
 0x1e6   :  { %2081 = vmatmul.mubr.bf16.vlgmr.msra.gmra.mrb[4].mxu0 %v1781_v44  ;;  %2121 = vmatmul.mubr.bf16.vlgmr.msra.gmra.mrb[4].mxu1 %v1783_v45 }
 0x2b9   :  { %v2434_v46 = vpop.f32.mrb[4].mxu0  ;;  %v2456_v47 = vpop.f32.mrb[4].mxu1 }
 0x2ba   :  { %v2435_v49 = vpop.f32.mrb[5].mxu0  ;;  %v2457_v50 = vpop.f32.mrb[5].mxu1 }
 0x2bb   :  { %v2436_v51 = vadd.f32 %v2435_v49, %v2434_v46  ;;  %v2458_v52 = vadd.f32 %v2457_v50, %v2456_v47  ;;  %v2437_v53 = vpop.f32.mrb[6].mxu0  ;;  %v2459_v54 = vpop.f32.mrb[6].mxu1 }
 0x2bc   :  { %v2438_v55 = vpop.f32.mrb[7].mxu0  ;;  %v2460_v56 = vpop.f32.mrb[7].mxu1 }
 0x2bd   :  { %v2083_v57 = vadd.f32 %v2436_v51, %v2385_v48 }
 0x2bf   :  { %v2123_v58 = vadd.f32 %v2458_v52, %v2083_v57 }
 0x2c1   :  { %2128 = vmax.xlane.f32.xlu0 %v2123_v58 }
 0x34e   :  { %v2129_v59 = vpop.xlane.xlu0 %2128 }
 0x34f   :  { %v2130_v60 = vsub.f32 %v2123_v58, %v2129_v59 }
 0x351   :  { %v2131_v61 = vmul.f32 1.442695, %v2130_v60 }
 0x353   :  { %2873 = vpow2.f32 %v2131_v61 }
 0x35d   :  { %v2874_v62 = vpop.eup %2873 }
 0x35e   :  { %2133 = vadd.xlane.f32.xlu0 %v2874_v62 }
 0x3eb   :  { %v2134_v63 = vpop.xlane.xlu0 %2133 }
 0x3ec   :  { %2875 = vrcp.f32 %v2134_v63 }
 0x3f6   :  { %v2876_v0 = vpop.eup %2875 }
 0x3f7   :  { %v2136_v1 = vmul.f32 %v2876_v0, %v2874_v62 }
 0x3f9   :  { %2137 = vst [vmem:[#allocation7] sm:$0xff] %v2136_v1 }
 0x3fa   :  { %2932 = shalt.err (!%p2929_p6)
}
 0x3fb   :  { %s2933_s8 = scalar_lea.hbm %s3058_s5, 128 }
 0x3fc   :  { %p2934_p7 = scmp.ne.s32.totalorder %s3058_s5, %s2933_s8  ;;  %p2937_p8 = scmp.lt.u32.totalorder %s2933_s8, %s3058_s5 }
 0x3fe   :  { %p2939_p9 = pnand %p2937_p8, %p2934_p7 }
 0x400   :  { %2942 = shalt.err (!%p2939_p9)
}
 0x401   :  { %2147 = dma.vmem_to_hbm [thread:$0]  %s2145_s29, 128, %s3058_s5, [#allocation4]  }
 0x402   :  { %2947 = dma.done.wait [#allocation4], 128  }
 0x403   :  { %2948 = vsyncadd [#allocation4], 4294967168 }
 0x404   :  { %2151 = vsyncpa [#allocation3], 1 }
 0x405   :  { %2152 = vsyncpa [#allocation6], 1 }
 0x406   :  { %2153 = vsyncpa [#allocation4], 1 }

</bundles_post_ra>
